<compile_context>
chip_gen: v7x
topology: tpu7x:2x2x1
jax: 0.10.0
libtpu: 0.0.40
codegen_flags: <defaults>
</compile_context>

<pallas_src>
import functools
import math

import jax
import jax.numpy as jnp
from jax.experimental import pallas as pl
from jax.experimental.pallas import tpu as pltpu

LANE = 128
SUBLANE = 8
REG_OUT = 4        # box regression output width
REG_PAD = LANE     # W3 packed to a full 128-lane MXU pass; output sliced to 4


def _round_up(x, n):
    return ((x + n - 1) // n) * n


# --------------------------------------------------------------------------
# Kernel
# --------------------------------------------------------------------------
def detr_head_kernel(x_ref,
                     wcat_ref, bcat_ref,      # fused [Wc | W1], [bc | b1]
                     w2_ref, b2_ref,
                     w3_ref, b3_ref,
                     cls_ref, reg_ref,
                     *, c_pad, num_classes):
    cdt = wcat_ref.dtype                      # compute dtype (bf16 or f32)
    x = x_ref[...].astype(cdt)                # cast once per tile, in VMEM

    # One wide MXU pass covering the cls head and the first reg linear.
    y = jnp.dot(x, wcat_ref[...], preferred_element_type=jnp.float32)
    y = y + bcat_ref[...]

    # cls head: store only the logical num_classes lanes (no padded writeback).
    cls_ref[...] = y[:, :num_classes].astype(cls_ref.dtype)

    # reg head: ReLU -> Linear -> ReLU -> Linear -> float32 sigmoid.
    # (split at c_pad is a 128-lane boundary)
    h = jnp.maximum(y[:, c_pad:], 0.0).astype(cdt)
    h = jnp.dot(h, w2_ref[...], preferred_element_type=jnp.float32) + b2_ref[...]
    h = jnp.maximum(h, 0.0).astype(cdt)
    r = jnp.dot(h, w3_ref[...], preferred_element_type=jnp.float32) + b3_ref[...]
    reg_ref[...] = jax.nn.sigmoid(r[:, :reg_ref.shape[-1]])   # f32, 4 lanes


# --------------------------------------------------------------------------
# Parameter init (matches PyTorch: xavier_uniform_ weights, default bias init)
# --------------------------------------------------------------------------
def xavier_uniform(key, fan_in, fan_out, dtype=jnp.float32):
    limit = math.sqrt(6.0 / (fan_in + fan_out))
    return jax.random.uniform(key, (fan_in, fan_out), dtype=dtype,
                              minval=-limit, maxval=limit)


def linear_bias(key, fan_in, fan_out, dtype=jnp.float32):
    bound = 1.0 / math.sqrt(fan_in)
    return jax.random.uniform(key, (1, fan_out), dtype=dtype,
                              minval=-bound, maxval=bound)


def init_detr_head_params(key, hidden_inplanes, num_classes):
    ks = jax.random.split(key, 8)
    return {
        "wc": xavier_uniform(ks[0], hidden_inplanes, num_classes),
        "bc": linear_bias(ks[1], hidden_inplanes, num_classes),
        "w1": xavier_uniform(ks[2], hidden_inplanes, hidden_inplanes),
        "b1": linear_bias(ks[3], hidden_inplanes, hidden_inplanes),
        "w2": xavier_uniform(ks[4], hidden_inplanes, hidden_inplanes),
        "b2": linear_bias(ks[5], hidden_inplanes, hidden_inplanes),
        "w3": xavier_uniform(ks[6], hidden_inplanes, 4),
        "b3": linear_bias(ks[7], hidden_inplanes, 4),
    }


# --------------------------------------------------------------------------
# One-time packing: pad to lane-dense shapes + fuse cls / first-reg weights.
# Zero padding is numerically inert (zero weight rows/cols, zero biases).
# Weights are stored in compute_dtype (bf16 by default -> bf16 MXU passes);
# biases stay f32 (added to the f32 accumulator).
# --------------------------------------------------------------------------
def pack_detr_head_params(params, hidden, num_classes,
                          compute_dtype=jnp.bfloat16):
    h_pad = max(LANE, _round_up(hidden, LANE))
    c_pad = max(LANE, _round_up(num_classes, LANE))

    def pad2(a, rows, cols):
        return jnp.pad(a, ((0, rows - a.shape[0]), (0, cols - a.shape[1])))

    wc = pad2(params["wc"], h_pad, c_pad)
    w1 = pad2(params["w1"], h_pad, h_pad)
    bc = pad2(params["bc"], 1, c_pad)
    b1 = pad2(params["b1"], 1, h_pad)

    return {
        "wcat": jnp.concatenate([wc, w1], axis=1).astype(compute_dtype),
        "bcat": jnp.concatenate([bc, b1], axis=1).astype(jnp.float32),
        "w2": pad2(params["w2"], h_pad, h_pad).astype(compute_dtype),
        "b2": pad2(params["b2"], 1, h_pad).astype(jnp.float32),
        "w3": pad2(params["w3"], h_pad, REG_PAD).astype(compute_dtype),
        "b3": pad2(params["b3"], 1, REG_PAD).astype(jnp.float32),
        "h_pad": h_pad, "c_pad": c_pad,
    }


def _choose_tile_m(m, tile_m):
    # At least 2 (and an even number of) row-grid steps so v7x megacore can
    # shard row tiles across both TensorCores; each tile <= tile_m and a
    # multiple of the 8-row sublane granularity.
    steps = max(2, -(-m // tile_m))
    steps += steps % 2
    tm = _round_up(-(-m // steps), SUBLANE)
    return min(tm, _round_up(m, SUBLANE))


# --------------------------------------------------------------------------
# Wrapper
# --------------------------------------------------------------------------
def detr_cls_reg_head(x, packed, num_classes, *, tile_m=1024):
    """x: (..., hidden). Returns (cls (..., num_classes) in x.dtype,
    reg (..., 4) float32 with sigmoid applied)."""
    orig_shape = x.shape
    hidden = orig_shape[-1]
    m = math.prod(orig_shape[:-1])

    h_pad = packed["h_pad"]
    c_pad = packed["c_pad"]

    tm = _choose_tile_m(m, tile_m)
    grid = (pl.cdiv(m, tm),)          # partial last row block handled by Pallas

    x2 = x.reshape(m, hidden)
    if hidden != h_pad:
        # Zero-pad the contraction (K) dim only -- required for correctness
        # (garbage K lanes could be NaN; NaN * 0-weight = NaN).  No row
        # padding: OOB rows of the partial last block are simply dropped on
        # output writeback.  allow_input_fusion lets XLA fuse this pad +
        # reshape into the kernel's input DMA instead of a separate HBM op.
        x2 = jnp.pad(x2, ((0, 0), (0, h_pad - hidden)))

    def wspec(shape):
        # Constant block index: weights stay VMEM-resident across row tiles.
        return pl.BlockSpec(shape, lambda i: (0, 0))

    x_itemsize = jnp.dtype(x2.dtype).itemsize
    cls_itemsize = jnp.dtype(x.dtype).itemsize
    weight_bytes = sum(
        packed[k].size * jnp.dtype(packed[k].dtype).itemsize
        for k in ("wcat", "bcat", "w2", "b2", "w3", "b3"))
    cost = pl.CostEstimate(
        flops=2 * m * h_pad * (c_pad + h_pad)      # fused cls + reg1 matmul
              + 2 * m * h_pad * h_pad              # second reg linear
              + 2 * m * h_pad * REG_PAD,           # final reg linear
        transcendentals=m * REG_OUT,               # sigmoid
        bytes_accessed=m * h_pad * x_itemsize + weight_bytes
                       + m * num_classes * cls_itemsize + m * REG_OUT * 4,
    )

    cls_out, reg_out = pl.pallas_call(
        functools.partial(detr_head_kernel, c_pad=c_pad,
                          num_classes=num_classes),
        out_shape=(
            jax.ShapeDtypeStruct((m, num_classes), x.dtype),
            jax.ShapeDtypeStruct((m, REG_OUT), jnp.float32),
        ),
        grid_spec=pltpu.PrefetchScalarGridSpec(
            num_scalar_prefetch=0,
            grid=grid,
            in_specs=[
                pl.BlockSpec((tm, h_pad), lambda i: (i, 0)),   # x (streamed)
                wspec((h_pad, c_pad + h_pad)),                 # [Wc | W1]
                wspec((1, c_pad + h_pad)),                     # [bc | b1]
                wspec((h_pad, h_pad)),                         # W2
                wspec((1, h_pad)),                             # b2
                wspec((h_pad, REG_PAD)),                       # W3
                wspec((1, REG_PAD)),                           # b3
            ],
            out_specs=(
                pl.BlockSpec((tm, num_classes), lambda i: (i, 0)),
                pl.BlockSpec((tm, REG_OUT), lambda i: (i, 0)),
            ),
        ),
        compiler_params=pltpu.CompilerParams(
            dimension_semantics=("parallel",),   # shard row tiles over v7x TCs
            vmem_limit_bytes=32 * 1024 * 1024,   # safe on v5e/v6e/v7x
            allow_input_fusion=[True, False, False, False, False, False, False],
        ),
        cost_estimate=cost,
    )(x2,
      packed["wcat"], packed["bcat"],
      packed["w2"], packed["b2"],
      packed["w3"], packed["b3"])

    cls_out = cls_out.reshape(*orig_shape[:-1], num_classes)
    reg_out = reg_out.reshape(*orig_shape[:-1], REG_OUT)
    return cls_out, reg_out


# --------------------------------------------------------------------------
# Pure-JAX reference.  compute_dtype=float32 reproduces the PyTorch forward
# exactly; compute_dtype=bfloat16 emulates the kernel's bf16-operand /
# f32-accumulation math for tight comparison of the optimized path.
# --------------------------------------------------------------------------
def reference_forward(x, params, compute_dtype=jnp.float32):
    cd = compute_dtype
    f32 = jnp.float32
    xc = x.astype(cd)
    cls = (jnp.dot(xc, params["wc"].astype(cd), preferred_element_type=f32)
           + params["bc"][0].astype(f32)).astype(x.dtype)
    h = jnp.maximum(jnp.dot(xc, params["w1"].astype(cd),
                            preferred_element_type=f32)
                    + params["b1"][0].astype(f32), 0.0).astype(cd)
    h = jnp.maximum(jnp.dot(h, params["w2"].astype(cd),
                            preferred_element_type=f32)
                    + params["b2"][0].astype(f32), 0.0).astype(cd)
    r = (jnp.dot(h, params["w3"].astype(cd), preferred_element_type=f32)
         + params["b3"][0].astype(f32))
    return cls, jax.nn.sigmoid(r)


if __name__ == "__main__":
    B, Q, H = 2, 8, 32          # batch, num_queries, hidden_inplanes
    NUM_CLASSES = 16

    key = jax.random.PRNGKey(0)
    kx, kp = jax.random.split(key)
    x = jax.random.normal(kx, (B, Q, H), dtype=jnp.float32)
    params = init_detr_head_params(kp, H, NUM_CLASSES)

    # 1) Exact-semantics check (fp32 compute path).
    packed_f32 = pack_detr_head_params(params, H, NUM_CLASSES,
                                       compute_dtype=jnp.float32)
    cls_f32, reg_f32 = detr_cls_reg_head(x, packed_f32, NUM_CLASSES)
    cls_f32 = jax.block_until_ready(cls_f32)
    reg_f32 = jax.block_until_ready(reg_f32)
    cls_ref, reg_ref = reference_forward(x, params, compute_dtype=jnp.float32)
    assert cls_f32.shape == (B, Q, NUM_CLASSES)
    assert reg_f32.shape == (B, Q, 4)
    assert reg_f32.dtype == jnp.float32
    assert jnp.allclose(cls_f32, cls_ref, atol=1e-5, rtol=1e-5)
    assert jnp.allclose(reg_f32, reg_ref, atol=1e-5, rtol=1e-5)

    # 2) Optimized bf16-MXU path (f32 accumulation), checked against a
    #    bf16-emulating reference.
    packed_bf16 = pack_detr_head_params(params, H, NUM_CLASSES,
                                        compute_dtype=jnp.bfloat16)
    cls_b16, reg_b16 = detr_cls_reg_head(x, packed_bf16, NUM_CLASSES)
    cls_b16 = jax.block_until_ready(cls_b16)
    reg_b16 = jax.block_until_ready(reg_b16)
    cls_refb, reg_refb = reference_forward(x, params,
                                           compute_dtype=jnp.bfloat16)
    assert cls_b16.shape == (B, Q, NUM_CLASSES)
    assert reg_b16.dtype == jnp.float32
    assert jnp.allclose(cls_b16, cls_refb, atol=2e-2, rtol=2e-2)
    assert jnp.allclose(reg_b16, reg_refb, atol=2e-2, rtol=2e-2)

    print("KERNEL_OK")
</pallas_src>

<mosaic_0001>
module attributes {stable_mosaic.version = 11 : i64} {
  func.func @detr_head_kernel(%arg0: i32, %arg1: memref<8x128xf32, #tpu.memory_space<vmem>>, %arg2: memref<128x256xf32, #tpu.memory_space<vmem>>, %arg3: memref<1x256xf32, #tpu.memory_space<vmem>>, %arg4: memref<128x128xf32, #tpu.memory_space<vmem>>, %arg5: memref<1x128xf32, #tpu.memory_space<vmem>>, %arg6: memref<128x128xf32, #tpu.memory_space<vmem>>, %arg7: memref<1x128xf32, #tpu.memory_space<vmem>>, %arg8: memref<8x16xf32, #tpu.memory_space<vmem>>, %arg9: memref<8x4xf32, #tpu.memory_space<vmem>>) attributes {dimension_semantics = [#tpu.dimension_semantics<parallel>], iteration_bounds = array<i64: 2>, scalar_prefetch = 0 : i64, scratch_operands = 0 : i64, tpu.core_type = #tpu.core_type<tc>, window_params = [{transform_indices = @transform_0, window_bounds = array<i64: 8, 128>}, {pipeline_mode = #tpu.pipeline_mode<synchronous>, transform_indices = @transform_1, window_bounds = array<i64: 128, 256>}, {pipeline_mode = #tpu.pipeline_mode<synchronous>, transform_indices = @transform_2, window_bounds = array<i64: 1, 256>}, {pipeline_mode = #tpu.pipeline_mode<synchronous>, transform_indices = @transform_3, window_bounds = array<i64: 128, 128>}, {pipeline_mode = #tpu.pipeline_mode<synchronous>, transform_indices = @transform_4, window_bounds = array<i64: 1, 128>}, {pipeline_mode = #tpu.pipeline_mode<synchronous>, transform_indices = @transform_5, window_bounds = array<i64: 128, 128>}, {pipeline_mode = #tpu.pipeline_mode<synchronous>, transform_indices = @transform_6, window_bounds = array<i64: 1, 128>}, {transform_indices = @transform_7, window_bounds = array<i64: 8, 16>}, {transform_indices = @transform_8, window_bounds = array<i64: 8, 4>}]} {
    %c0 = arith.constant 0 : index
    %c0_0 = arith.constant 0 : index
    %0 = vector.load %arg1[%c0, %c0_0] : memref<8x128xf32, #tpu.memory_space<vmem>>, vector<8x128xf32>
    %c0_1 = arith.constant 0 : index
    %c0_2 = arith.constant 0 : index
    %1 = vector.load %arg2[%c0_1, %c0_2] : memref<128x256xf32, #tpu.memory_space<vmem>>, vector<128x256xf32>
    %cst = arith.constant dense<0.000000e+00> : vector<8x256xf32>
    %2 = tpu.matmul %0, %1, %cst {dimension_numbers = #tpu.dot_dimension_numbers<[1], [0], [0], [1], [0, 0, 1, 1], [], []>} : vector<8x128xf32>, vector<128x256xf32>, vector<8x256xf32> -> vector<8x256xf32>
    %c0_3 = arith.constant 0 : index
    %c0_4 = arith.constant 0 : index
    %3 = vector.load %arg3[%c0_3, %c0_4] : memref<1x256xf32, #tpu.memory_space<vmem>>, vector<1x256xf32>
    %4 = vector.broadcast %3 : vector<1x256xf32> to vector<8x256xf32>
    %5 = arith.addf %2, %4 : vector<8x256xf32>
    %6 = vector.extract_strided_slice %5 {offsets = [0, 0], sizes = [8, 16], strides = [1, 1]} : vector<8x256xf32> to vector<8x16xf32>
    %c0_5 = arith.constant 0 : index
    %c0_6 = arith.constant 0 : index
    %7 = vector.load %arg8[%c0_5, %c0_6] : memref<8x16xf32, #tpu.memory_space<vmem>>, vector<8x16xf32>
    tpu.vector_store %arg8[%c0_5, %c0_6], %6 {strides = array<i32>} : memref<8x16xf32, #tpu.memory_space<vmem>>, vector<8x16xf32>,
    %8 = vector.extract_strided_slice %5 {offsets = [0, 128], sizes = [8, 128], strides = [1, 1]} : vector<8x256xf32> to vector<8x128xf32>
    %cst_7 = arith.constant 0.000000e+00 : f32
    %9 = vector.broadcast %cst_7 : f32 to vector<8x128xf32>
    %10 = arith.maximumf %8, %9 : vector<8x128xf32>
    %c0_8 = arith.constant 0 : index
    %c0_9 = arith.constant 0 : index
    %11 = vector.load %arg4[%c0_8, %c0_9] : memref<128x128xf32, #tpu.memory_space<vmem>>, vector<128x128xf32>
    %cst_10 = arith.constant dense<0.000000e+00> : vector<8x128xf32>
    %12 = tpu.matmul %10, %11, %cst_10 {dimension_numbers = #tpu.dot_dimension_numbers<[1], [0], [0], [1], [0, 0, 1, 1], [], []>} : vector<8x128xf32>, vector<128x128xf32>, vector<8x128xf32> -> vector<8x128xf32>
    %c0_11 = arith.constant 0 : index
    %c0_12 = arith.constant 0 : index
    %13 = vector.load %arg5[%c0_11, %c0_12] : memref<1x128xf32, #tpu.memory_space<vmem>>, vector<1x128xf32>
    %14 = vector.broadcast %13 : vector<1x128xf32> to vector<8x128xf32>
    %15 = arith.addf %12, %14 : vector<8x128xf32>
    %cst_13 = arith.constant 0.000000e+00 : f32
    %16 = vector.broadcast %cst_13 : f32 to vector<8x128xf32>
    %17 = arith.maximumf %15, %16 : vector<8x128xf32>
    %c0_14 = arith.constant 0 : index
    %c0_15 = arith.constant 0 : index
    %18 = vector.load %arg6[%c0_14, %c0_15] : memref<128x128xf32, #tpu.memory_space<vmem>>, vector<128x128xf32>
    %cst_16 = arith.constant dense<0.000000e+00> : vector<8x128xf32>
    %19 = tpu.matmul %17, %18, %cst_16 {dimension_numbers = #tpu.dot_dimension_numbers<[1], [0], [0], [1], [0, 0, 1, 1], [], []>} : vector<8x128xf32>, vector<128x128xf32>, vector<8x128xf32> -> vector<8x128xf32>
    %c0_17 = arith.constant 0 : index
    %c0_18 = arith.constant 0 : index
    %20 = vector.load %arg7[%c0_17, %c0_18] : memref<1x128xf32, #tpu.memory_space<vmem>>, vector<1x128xf32>
    %21 = vector.broadcast %20 : vector<1x128xf32> to vector<8x128xf32>
    %22 = arith.addf %19, %21 : vector<8x128xf32>
    %23 = vector.extract_strided_slice %22 {offsets = [0, 0], sizes = [8, 4], strides = [1, 1]} : vector<8x128xf32> to vector<8x4xf32>
    %24 = arith.negf %23 : vector<8x4xf32>
    %25 = math.exp %24 : vector<8x4xf32>
    %cst_19 = arith.constant 1.000000e+00 : f32
    %26 = vector.broadcast %cst_19 : f32 to vector<8x4xf32>
    %27 = arith.addf %26, %25 : vector<8x4xf32>
    %28 = arith.divf %26, %27 : vector<8x4xf32>
    %c0_20 = arith.constant 0 : index
    %c0_21 = arith.constant 0 : index
    %29 = vector.load %arg9[%c0_20, %c0_21] : memref<8x4xf32, #tpu.memory_space<vmem>>, vector<8x4xf32>
    tpu.vector_store %arg9[%c0_20, %c0_21], %28 {strides = array<i32>} : memref<8x4xf32, #tpu.memory_space<vmem>>, vector<8x4xf32>,
    return
  }
  func.func @transform_0(%arg0: i32) -> (i32, i32) {
    %c0_i32 = arith.constant 0 : i32
    %c0_i32_0 = arith.constant 0 : i32
    return %arg0, %c0_i32 : i32, i32
  }
  func.func @transform_1(%arg0: i32) -> (i32, i32) {
    %c0_i32 = arith.constant 0 : i32
    %c0_i32_0 = arith.constant 0 : i32
    %c0_i32_1 = arith.constant 0 : i32
    return %c0_i32, %c0_i32_0 : i32, i32
  }
  func.func @transform_2(%arg0: i32) -> (i32, i32) {
    %c0_i32 = arith.constant 0 : i32
    %c0_i32_0 = arith.constant 0 : i32
    %c0_i32_1 = arith.constant 0 : i32
    return %c0_i32, %c0_i32_0 : i32, i32
  }
  func.func @transform_3(%arg0: i32) -> (i32, i32) {
    %c0_i32 = arith.constant 0 : i32
    %c0_i32_0 = arith.constant 0 : i32
    %c0_i32_1 = arith.constant 0 : i32
    return %c0_i32, %c0_i32_0 : i32, i32
  }
  func.func @transform_4(%arg0: i32) -> (i32, i32) {
    %c0_i32 = arith.constant 0 : i32
    %c0_i32_0 = arith.constant 0 : i32
    %c0_i32_1 = arith.constant 0 : i32
    return %c0_i32, %c0_i32_0 : i32, i32
  }
  func.func @transform_5(%arg0: i32) -> (i32, i32) {
    %c0_i32 = arith.constant 0 : i32
    %c0_i32_0 = arith.constant 0 : i32
    %c0_i32_1 = arith.constant 0 : i32
    return %c0_i32, %c0_i32_0 : i32, i32
  }
  func.func @transform_6(%arg0: i32) -> (i32, i32) {
    %c0_i32 = arith.constant 0 : i32
    %c0_i32_0 = arith.constant 0 : i32
    %c0_i32_1 = arith.constant 0 : i32
    return %c0_i32, %c0_i32_0 : i32, i32
  }
  func.func @transform_7(%arg0: i32) -> (i32, i32) {
    %c0_i32 = arith.constant 0 : i32
    %c0_i32_0 = arith.constant 0 : i32
    return %arg0, %c0_i32 : i32, i32
  }
  func.func @transform_8(%arg0: i32) -> (i32, i32) {
    %c0_i32 = arith.constant 0 : i32
    %c0_i32_0 = arith.constant 0 : i32
    return %arg0, %c0_i32 : i32, i32
  }
}

</mosaic_0001>

<bundles_post_ra>
// kernel: tpu_custom_call.1
= control target key start
LH: loop header
LB: loop body
LE: loop exit
PB: predicated region body
PF: predicated region fallthrough
CT: control target
= control target key end

     0   :  { %s1660_s0 = inlined_call_operand.hbm [shape: f32[16,128], index: 0, kind: input, shape index: {}]   ;;  %s1661_s1 = inlined_call_operand.hbm [shape: f32[128,256], index: 1, kind: input, shape index: {}]   ;;  %s1662_s2 = inlined_call_operand.vmem [shape: f32[1,256], index: 2, kind: input, shape index: {}]   ;;  %s1663_s3 = inlined_call_operand.hbm [shape: f32[128,128], index: 3, kind: input, shape index: {}]   ;;  %s1664_s4 = inlined_call_operand.vmem [shape: f32[1,128], index: 4, kind: input, shape index: {}]   ;;  %s1665_s5 = inlined_call_operand.hbm [shape: f32[128,128], index: 5, kind: input, shape index: {}]   ;;  %s1666_s6 = inlined_call_operand.vmem [shape: f32[1,128], index: 6, kind: input, shape index: {}]   ;;  %s1667_s7 = inlined_call_operand.hbm [shape: f32[16,16], index: 7, kind: output, shape index: {0}]   ;;  %s1668_s8 = inlined_call_operand.vmem [shape: f32[16,4], index: 8, kind: output, shape index: {1}]  }
   0x1   :  { %1674 = sst [smem:[#allocation17_spill]] %s1661_s1 }
   0x2   :  { %14 = vsyncpa [#allocation3], 0 }
   0x3   :  { %16 = vsyncpa [#allocation3 + $0x1], 0 }
   0x4   :  { %17 = vsyncpa [#allocation6], 0 }
   0x5   :  { %18 = vsyncpa [#allocation9], 0 }
   0x6   :  { %19 = vsyncpa [#allocation4], 0 }
   0x7   :  { %21 = vsyncpa [#allocation4 + $0x1], 0  ;;  %s1375_s27 = smov 0   ;;  %s1377_s28 = smov 0  }
   0x8   :  { %s1379_s29 = smov 0   ;;  %s1381_s30 = smov 0  }
   0x9 LB: > { %1675 = sst [smem:[#allocation15_spill]] %s1304_s27  ;;  %s1396_s9 = sadd.s32 4294967295, %s1316_s30   ;;  %s1316_s30 = sphi %s1381_s30, %s1699_s30   ;;  %s1312_s29 = sphi %s1379_s29, %s1698_s29   ;;  %s1308_s28 = sphi %s1377_s28, %s1697_s28   ;;  %s1304_s27 = sphi %s1375_s27, %s1696_s27  }
   0xa   : > { %s834_s10 = sadd.s32 4294967294, %s1316_s30   ;;  %p47_p0 = scmp.ne.s32.totalorder %s1308_s28, %s1304_s27 }
   0xb   : > { %p1669_p1 = scmp.eq.s32.totalorder %s1396_s9, 0  ;;  %p203_p3 = scmp.eq.s32.totalorder %s834_s10, 1 }
   0xc   : > { %p835_p5 = scmp.ge.s32.totalorder %s1316_s30, 1  ;;  %p236_p7 = scmp.lt.s32.totalorder %s1316_s30, 3 }
   0xd   : > { %p1405_p4 = por %p1669_p1, %p47_p0  ;;  %p1410_p6 = por %p203_p3, %p47_p0 }
   0xe   : > { %p1415_p8 = pnand %p835_p5, %p236_p7  ;;  %s1318_s14 = smov [#allocation5]  }
   0xf   : > { %s1676_s11 = scalar_select %p1405_p4, 1, 0 }
  0x10   : > { %s1677_s12 = scalar_select %p1410_p6, 1, 0 }
  0x11   : > { %s1679_s13 = scalar_select %p1415_p8, 1, 0 }
  0x12   : > { %1678 = sst [smem:[#allocation16_spill]] %s1677_s12  ;;  %s248_s15 = sshll.u32 %s1318_s14, 4  ;;  %s1419_s15 = int_to_ptr.vmem [resolvable:$true] %s248_s15 }
  0x13   : > { %p1056_p9 = pneg %p1415_p8  ;;  %s1319_s17 = smov [#allocation7]  }
  0x14   : > { %s264_s18 = sshll.u32 %s1319_s17, 4  ;;  %s1681_s1 = sld [smem:[#allocation17_spill]]  ;;  %s1430_s18 = int_to_ptr.vmem [resolvable:$true] %s264_s18 }
  0x15   : > { %p1426_p11 = pnand %p1056_p9, %p1669_p1 }
  0x17   : > { %p1440_p13 = pneg %p1426_p11 }
  0x1a   : > { %s1128_s21 = scalar_lea.hbm %s1681_s1, 4096 }
  0x1b   : > { %p1129_p12 = scmp.ne.s32.totalorder %s1681_s1, %s1128_s21  ;;  %p1135_p5 = scmp.lt.u32.totalorder %s1128_s21, %s1681_s1 }
  0x1d   : > { %p1131_p0 = pnand %p1440_p13, %p1129_p12 }
  0x1f   : > { %p1132_p3 = pneg %p1131_p0 }
  0x21   : > { %p1137_p7 = pnand %p1135_p5, %p1132_p3 }
  0x23   : > { %1140 = shalt.err (!%p1137_p7)
}
  0x24   : > { %s1141_s10 = scalar_lea.vmem %s1419_s15, 4096  ;;  %p1149_p2 = scmp.lt.s32.totalorder %s1419_s15, %s1419_s15 }
  0x25   : > { %p1142_p9 = scmp.ne.s32.totalorder %s1419_s15, %s1141_s10  ;;  %p1150_p6 = scmp.lt.s32.totalorder %s1141_s10, %s1141_s10 }
  0x27   : > { %p1144_p10 = pnand %p1142_p9, %p1440_p13  ;;  %p1151_p12 = por %p1150_p6, %p1149_p2 }
  0x29   : > { %p1145_p1 = pneg %p1144_p10 }
  0x2b   : > { %p1152_p0 = pnand %p1151_p12, %p1145_p1 }
  0x2d   : > { %1155 = shalt.err (!%p1152_p0)
}
  0x2e   : > { %s1320_s14 = smov 256   ;;  %s1321_s17 = smov 16  }
  0x2f   : > { %1059 = dma.hbm_to_vmem [thread:$0]  (!%p1426_p11), %s1681_s1, 4096, %s1419_s15, [#allocation6], %s1320_s14, %s1320_s14, %s1321_s17  }
  0x30   : > { %s1156_s23 = scalar_lea.hbm %s1663_s3, 2048 }
  0x31   : > { %p1157_p2 = scmp.ne.s32.totalorder %s1663_s3, %s1156_s23  ;;  %p1163_p10 = scmp.lt.u32.totalorder %s1156_s23, %s1663_s3 }
  0x33   : > { %p1159_p1 = pnand %p1157_p2, %p1440_p13 }
  0x35   : > { %p1160_p6 = pneg %p1159_p1 }
  0x37   : > { %p1165_p3 = pnand %p1163_p10, %p1160_p6 }
  0x39   : > { %1168 = shalt.err (!%p1165_p3)
}
  0x3a   : > { %s1169_s15 = scalar_lea.vmem %s1430_s18, 2048  ;;  %p1177_p12 = scmp.lt.s32.totalorder %s1430_s18, %s1430_s18 }
  0x3b   : > { %p1170_p5 = scmp.ne.s32.totalorder %s1430_s18, %s1169_s15  ;;  %p1178_p0 = scmp.lt.s32.totalorder %s1169_s15, %s1169_s15 }
  0x3d   : > { %p1172_p7 = pnand %p1170_p5, %p1440_p13  ;;  %p1179_p2 = por %p1178_p0, %p1177_p12 }
  0x3f   : > { %p1173_p9 = pneg %p1172_p7 }
  0x41   : > { %p1180_p1 = pnand %p1179_p2, %p1173_p9 }
  0x43   : > { %1183 = shalt.err (!%p1180_p1)
}
  0x44   : > { %s1322_s14 = smov 128   ;;  %s1323_s12 = smov 8  }
  0x45   : > { %1062 = dma.hbm_to_vmem [thread:$0]  (!%p1426_p11), %s1663_s3, 2048, %s1430_s18, [#allocation6], %s1322_s14, %s1322_s14, %s1323_s12  }
  0x46   : > { %s1324_s20 = smov [#allocation8]   ;;  %s1485_s22 = sadd.s32 1, %s1316_s30  }
  0x47   : > { %s280_s21 = sshll.u32 %s1324_s20, 4  ;;  %s1184_s26 = scalar_lea.hbm %s1665_s5, 2048  ;;  %s281_s21 = int_to_ptr.vmem [resolvable:$true] %s280_s21 }
  0x48   : > { %p1185_p6 = scmp.ne.s32.totalorder %s1665_s5, %s1184_s26  ;;  %p1191_p5 = scmp.lt.u32.totalorder %s1184_s26, %s1665_s5 }
  0x4a   : > { %p1187_p10 = pnand %p1185_p6, %p1440_p13 }
  0x4c   : > { %p1188_p3 = pneg %p1187_p10 }
  0x4e   : > { %p1193_p7 = pnand %p1191_p5, %p1188_p3 }
  0x50   : > { %1196 = shalt.err (!%p1193_p7)
}
  0x51   : > { %s1197_s18 = scalar_lea.vmem %s281_s21, 2048  ;;  %p1205_p2 = scmp.lt.s32.totalorder %s281_s21, %s281_s21 }
  0x52   : > { %p1198_p9 = scmp.ne.s32.totalorder %s281_s21, %s1197_s18  ;;  %p1206_p1 = scmp.lt.s32.totalorder %s1197_s18, %s1197_s18 }
  0x54   : > { %p1200_p12 = pnand %p1198_p9, %p1440_p13  ;;  %p1207_p4 = por %p1206_p1, %p1205_p2 }
  0x56   : > { %p1201_p0 = pneg %p1200_p12 }
  0x58   : > { %p1208_p8 = pnand %p1207_p4, %p1201_p0 }
  0x5a   : > { %1211 = shalt.err (!%p1208_p8)
}
  0x5b   : > { %1065 = dma.hbm_to_vmem [thread:$0]  (!%p1426_p11), %s1665_s5, 2048, %s281_s21, [#allocation9], %s1322_s14, %s1322_s14, %s1323_s12  }
  0x5c   : > { %s31_s1 = ssub.s32 %s1316_s30, %s1485_s22  ;;  %s34_s27 = sadd.s32 1, %s1312_s29 }
  0x5d   : > { %p32_p4 = scmp.eq.s32.totalorder %s31_s1, 0  ;;  %p41_p8 = scmp.ne.s32.totalorder %s1312_s29, %s1308_s28 }
  0x5e   : > { %p42_p13 = scmp.eq.s32.totalorder %s1316_s30, 0  ;;  %p1077_p6 = scmp.lt.s32.totalorder %s1316_s30, 2 }
  0x5f   : > { %s1513_s16 = scalar_select %p32_p4, %s1312_s29, %s34_s27  }
  0x60   : > { %p43_p10 = por %p42_p13, %p41_p8  ;;  %p1683_p3 = scmp.eq.s32.totalorder %s1396_s9, 1 }
  0x61   : > { %s297_s20 = sand.u32 1, %s1312_s29   ;;  %s841_s23 = sshll.u32 %s1316_s30, 7 }
  0x62   : > { %p1517_p5 = por %p1683_p3, %p41_p8  ;;  %s840_s25 = sshll.u32 %s297_s20, 3 }
  0x63   : > { %s1526_s14 = scalar_lea.hbm %s1660_s0, %s841_s23  ;;  %s301_s12 = scalar_lea.vmem [#allocation2], %s840_s25 }
  0x64   : > { %s308_s21 = sshll.u32 %s301_s12, 4  ;;  %p1528_p11 = pnand %p1077_p6, %p43_p10  ;;  %s1532_s21 = int_to_ptr.vmem [resolvable:$true] %s308_s21 }
  0x65   : > { %s298_s18 = scalar_lea.sflag [#allocation3], %s297_s20  ;;  %s1212_s17 = scalar_lea.hbm %s1526_s14, 128 }
  0x66   : > { %p1213_p7 = scmp.ne.s32.totalorder %s1526_s14, %s1212_s17  ;;  %p1214_p9 = pneg %p1528_p11 }
  0x67   : > { %s1217_s27 = scalar_lea.hbm %s1660_s0, 256  ;;  %p1218_p2 = scmp.lt.u32.totalorder %s1526_s14, %s1660_s0 }
  0x68   : > { %p1215_p12 = pnand %p1214_p9, %p1213_p7  ;;  %p1219_p1 = scmp.lt.u32.totalorder %s1217_s27, %s1212_s17 }
  0x69   : > { %p1221_p8 = scmp.lt.u32.totalorder %s1212_s17, %s1526_s14 }
  0x6a   : > { %p1216_p0 = pneg %p1215_p12  ;;  %p1220_p4 = por %p1219_p1, %p1218_p2 }
  0x6c   : > { %p1222_p13 = por %p1221_p8, %p1220_p4 }
  0x6e   : > { %p1223_p6 = pnand %p1222_p13, %p1216_p0 }
  0x70   : > { %1226 = shalt.err (!%p1223_p6)
}
  0x71   : > { %s1227_s20 = scalar_lea.vmem %s1532_s21, 128  ;;  %s1325_s26 = smov [#allocation2]  }
  0x72   : > { %p1228_p10 = scmp.ne.s32.totalorder %s1532_s21, %s1227_s20  ;;  %s1232_s10 = sshll.u32 %s1325_s26, 4  ;;  %s1233_s10 = int_to_ptr.vmem [resolvable:$false] %s1232_s10 }
  0x73   : > { %s1234_s12 = scalar_lea.vmem %s1233_s10, 256  ;;  %p1235_p12 = scmp.lt.s32.totalorder %s1532_s21, %s1233_s10 }
  0x74   : > { %p1230_p3 = pnand %p1228_p10, %p1214_p9  ;;  %p1236_p2 = scmp.lt.s32.totalorder %s1234_s12, %s1227_s20 }
  0x76   : > { %p1231_p7 = pneg %p1230_p3  ;;  %p1237_p1 = por %p1236_p2, %p1235_p12 }
  0x78   : > { %p1238_p4 = pnand %p1237_p1, %p1231_p7 }
  0x7a   : > { %1241 = shalt.err (!%p1238_p4)
}
  0x7b   : > { %1069 = dma.hbm_to_vmem [thread:$0]  (!%p1528_p11), %s1526_s14, 128, %s1532_s21, %s298_s18  }
  0x7c   : > { %p1686_p0 = scmp.ne.s32.totalorder %s1679_s13, 0 }
  0x7d   : > { %s1562_s17 = sand.u32 (!%p1686_p0), 1, %s1308_s28   ;;  %p1687_p9 = scmp.ne.s32.totalorder (!%p1686_p0), %s1676_s11, 0 }
  0x7e   : > { %317 = sbr.rel (%p1686_p0) target bundleno = 850 (0x352), region = 48  ;;  %s843_s19 = sshll.u32 (!%p1686_p0), %s1562_s17, 3 }
  0x7f   : > { %s320_s1 = scalar_lea.sflag (!%p1686_p0), [#allocation3], %s1562_s17  ;;  %s1568_s27 = scalar_lea.vmem (!%p1686_p0), [#allocation2], %s843_s19 }
  0x85   : > { %1287 = dma.done.wait (%p1687_p9), %s320_s1, 128  }
  0x86   : > { %1289 = vsyncadd (%p1687_p9), %s320_s1, 4294967168  ;;  %p1688_p11 = scmp.eq.s32.totalorder %s1396_s9, 0 }
  0x88   : > { %1291 = dma.done.wait (%p1688_p11), [#allocation6], 6144   ;;  %p1689_p8 = pmov %p1688_p11 }
  0x8a   : > { %1293 = vsyncadd (%p1689_p8), [#allocation6], 4294961152  ;;  %p1690_p13 = pmov %p1689_p8 }
  0x8b   : > { %p1691_p6 = pmov %p1689_p8 }
  0x8c   : > { %1295 = dma.done.wait (%p1690_p13), [#allocation9], 2048  }
  0x8d   : > { %1297 = vsyncadd (%p1691_p6), [#allocation9], 4294965248  ;;  %v1326_v0 = vmov 0.0   ;;  %v1327_v1 = vmov 0.0|0.0   ;;  %v378_v2 = vld [vmem:[#allocation5 + $0x8] sm:$0xff]  ;;  %v380_v3 = vld [vmem:[#allocation5 + $0x18] sm:$0xff] }
  0x8e   : > { %485 = vmatprep.mubr.f32.mxu0 %v1326_v0  ;;  %992 = vmatprep.subr.bf16.mxu1 %v1327_v1  ;;  %v377_v4 = vld [vmem:[#allocation5] sm:$0xff]  ;;  %v960_v5 = vpack.c.bf16 %v380_v3, %v378_v2  ;;  %v379_v6 = vld [vmem:[#allocation5 + $0x10] sm:$0xff]  ;;  %v382_v7 = vld [vmem:[#allocation5 + $0x28] sm:$0xff]  ;;  %vm1328_vm0 = vmmov 0   ;;  %vm492_vm1 = vcmask 130048   ;;  %s365_s14 = scalar_lea.vmem [#allocation10], %s843_s19 }
  0x8f   : > { %v384_v8 = vld [vmem:[#allocation5 + $0x38] sm:$0xff]  ;;  %v962_v9 = vpack.c.bf16 %v379_v6, %v377_v4  ;;  %v381_v11 = vld [vmem:[#allocation5 + $0x20] sm:$0xff]  ;;  %v383_v12 = vld [vmem:[#allocation5 + $0x30] sm:$0xff]  ;;  %922 = vmatprep.mubr.msk.f32.mxu1 %vm1328_vm0, %v1326_v0  ;;  %s853_s18 = sshll.u32 %s1396_s9, 7  ;;  %s708_s23 = sshll.u32 %s365_s14, 4  ;;  %s709_s23 = int_to_ptr.vmem [resolvable:$true] %s708_s23 }
  0x90   : > { %v964_v10 = vpack.c.bf16 %v384_v8, %v382_v7  ;;  %v386_v13 = vld [vmem:[#allocation5 + $0x48] sm:$0xff]  ;;  %961 = vmatprep.subr.bf16.mxu0 %v960_v5  ;;  %v388_v14 = vld [vmem:[#allocation5 + $0x58] sm:$0xff]  ;;  %v966_v15 = vpack.c.bf16 %v383_v12, %v381_v11  ;;  %v385_v17 = vld [vmem:[#allocation5 + $0x40] sm:$0xff]  ;;  %s1614_s26 = scalar_lea.hbm %s1667_s7, %s853_s18  ;;  %s691_s10 = scalar_lea.sflag [#allocation4], %s1562_s17 }
  0x91   : > { %963 = vmatpush1.bf16.msra.mxu0 %v962_v9  ;;  %v968_v16 = vpack.c.bf16 %v388_v14, %v386_v13  ;;  %v387_v18 = vld [vmem:[#allocation5 + $0x50] sm:$0xff]  ;;  %v390_v19 = vld [vmem:[#allocation5 + $0x68] sm:$0xff]  ;;  %v392_v20 = vld [vmem:[#allocation5 + $0x78] sm:$0xff]  ;;  %s1242_s12 = scalar_lea.vmem %s709_s23, 128  ;;  %s1329_s19 = smov [#allocation10]  }
  0x92   : > { %965 = vmatprep.subr.bf16.mxu0 %v964_v10  ;;  %v970_v21 = vpack.c.bf16 %v387_v18, %v385_v17  ;;  %v972_v22 = vpack.c.bf16 %v392_v20, %v390_v19  ;;  %v389_v23 = vld [vmem:[#allocation5 + $0x60] sm:$0xff]  ;;  %v391_v24 = vld [vmem:[#allocation5 + $0x70] sm:$0xff]  ;;  %v394_v25 = vld [vmem:[#allocation5 + $0x88] sm:$0xff]  ;;  %p1243_p10 = scmp.ne.s32.totalorder %s709_s23, %s1242_s12  ;;  %s1246_s1 = sshll.u32 %s1329_s19, 4  ;;  %s1247_s1 = int_to_ptr.vmem [resolvable:$false] %s1246_s1 }
  0x93   : > { %v396_v26 = vld [vmem:[#allocation5 + $0x98] sm:$0xff]  ;;  %v495_v27 = vld [vmem:[#allocation7] sm:$0xff]  ;;  %v496_v28 = vld [vmem:[#allocation7 + $0x8] sm:$0xff]  ;;  %v974_v30 = vpack.c.bf16 %v391_v24, %v389_v23  ;;  %p1249_p12 = scmp.lt.s32.totalorder %s709_s23, %s1247_s1 }
  0x94   : > { %v497_v29 = vld [vmem:[#allocation7 + $0x10] sm:$0xff]  ;;  %v993_v31 = vpack.c.bf16 %v496_v28, %v495_v27  ;;  %v498_v32 = vld [vmem:[#allocation7 + $0x18] sm:$0xff]  ;;  %v976_v33 = vpack.c.bf16 %v396_v26, %v394_v25  ;;  %v393_v34 = vld [vmem:[#allocation5 + $0x80] sm:$0xff]  ;;  %p1244_p3 = pnand %p1243_p10, %p1517_p5 }
  0x95   : > { %967 = vmatpush1.bf16.msra.mxu0 %v966_v15  ;;  %v395_v35 = vld [vmem:[#allocation5 + $0x90] sm:$0xff]  ;;  %v398_v36 = vld [vmem:[#allocation5 + $0xa8] sm:$0xff]  ;;  %v400_v37 = vld [vmem:[#allocation5 + $0xb8] sm:$0xff]  ;;  %v996_v38 = vpack.c.bf16 %v498_v32, %v497_v29 }
  0x96   : > { %969 = vmatprep.subr.bf16.mxu0 %v968_v16  ;;  %994 = vmatpush3.bf16.msra.mxu1 %v993_v31  ;;  %v499_v39 = vld [vmem:[#allocation7 + $0x20] sm:$0xff]  ;;  %v500_v40 = vld [vmem:[#allocation7 + $0x28] sm:$0xff]  ;;  %v978_v41 = vpack.c.bf16 %v395_v35, %v393_v34  ;;  %v980_v42 = vpack.c.bf16 %v400_v37, %v398_v36  ;;  %v399_v44 = vld [vmem:[#allocation5 + $0xb0] sm:$0xff]  ;;  %p1245_p7 = pneg %p1244_p3 }
  0x97   : > { %995 = vmatprep.subr.bf16.mxu1 %v1327_v1  ;;  %v397_v43 = vld [vmem:[#allocation5 + $0xa0] sm:$0xff]  ;;  %v402_v45 = vld [vmem:[#allocation5 + $0xc8] sm:$0xff]  ;;  %v404_v46 = vld [vmem:[#allocation5 + $0xd8] sm:$0xff]  ;;  %v999_v47 = vpack.c.bf16 %v500_v40, %v499_v39 }
  0x98   : > { %v501_v48 = vld [vmem:[#allocation7 + $0x30] sm:$0xff]  ;;  %v502_v49 = vld [vmem:[#allocation7 + $0x38] sm:$0xff]  ;;  %v982_v50 = vpack.c.bf16 %v399_v44, %v397_v43  ;;  %v984_v51 = vpack.c.bf16 %v404_v46, %v402_v45  ;;  %v401_v52 = vld [vmem:[#allocation5 + $0xc0] sm:$0xff] }
  0x99   : > { %971 = vmatpush1.bf16.msra.mxu0 %v970_v21  ;;  %v403_v53 = vld [vmem:[#allocation5 + $0xd0] sm:$0xff]  ;;  %v406_v54 = vld [vmem:[#allocation5 + $0xe8] sm:$0xff]  ;;  %v408_v55 = vld [vmem:[#allocation5 + $0xf8] sm:$0xff]  ;;  %v1002_v56 = vpack.c.bf16 %v502_v49, %v501_v48 }
  0x9a   : > { %973 = vmatprep.subr.bf16.mxu0 %v972_v22  ;;  %997 = vmatpush3.bf16.msra.mxu1 %v996_v38  ;;  %v503_v57 = vld [vmem:[#allocation7 + $0x40] sm:$0xff]  ;;  %v504_v58 = vld [vmem:[#allocation7 + $0x48] sm:$0xff]  ;;  %v986_v59 = vpack.c.bf16 %v403_v53, %v401_v52  ;;  %v988_v60 = vpack.c.bf16 %v408_v55, %v406_v54  ;;  %v407_v62 = vld [vmem:[#allocation5 + $0xf0] sm:$0xff] }
  0x9b   : > { %998 = vmatprep.subr.bf16.mxu1 %v1327_v1  ;;  %v405_v61 = vld [vmem:[#allocation5 + $0xe0] sm:$0xff]  ;;  %v1005_v63 = vpack.c.bf16 %v504_v58, %v503_v57  ;;  %v505_v2 = vld [vmem:[#allocation7 + $0x50] sm:$0xff]  ;;  %v506_v3 = vld [vmem:[#allocation7 + $0x58] sm:$0xff] }
  0x9c   : > { %v990_v4 = vpack.c.bf16 %v407_v62, %v405_v61  ;;  %v1008_v5 = vpack.c.bf16 %v506_v3, %v505_v2  ;;  %v507_v6 = vld [vmem:[#allocation7 + $0x60] sm:$0xff]  ;;  %v508_v7 = vld [vmem:[#allocation7 + $0x68] sm:$0xff]  ;;  %v376_v8 = vld [vmem:[%s1568_s27] sm:$0xff]  ;;  %s1248_s27 = scalar_lea.vmem %s1247_s1, 256 }
  0x9d   : > { %975 = vmatpush1.bf16.msra.mxu0 %v974_v30  ;;  %v1011_v9 = vpack.c.bf16 %v508_v7, %v507_v6  ;;  %v509_v10 = vld [vmem:[#allocation7 + $0x70] sm:$0xff]  ;;  %v510_v11 = vld [vmem:[#allocation7 + $0x78] sm:$0xff]  ;;  %v589_v13 = vld [vmem:[#allocation8] sm:$0xff]  ;;  %p1250_p2 = scmp.lt.s32.totalorder %s1248_s27, %s1242_s12 }
  0x9e   : > { %977 = vmatprep.subr.bf16.mxu0 %v976_v33  ;;  %1000 = vmatpush3.bf16.msra.mxu1 %v999_v47  ;;  %v1014_v12 = vpack.c.bf16 %v510_v11, %v509_v10  ;;  %v590_v14 = vld [vmem:[#allocation8 + $0x8] sm:$0xff]  ;;  %v591_v15 = vld [vmem:[#allocation8 + $0x10] sm:$0xff]  ;;  %v592_v17 = vld [vmem:[#allocation8 + $0x18] sm:$0xff]  ;;  %v411_v33 = vlaneseq }
  0x9f   : > { %1001 = vmatprep.subr.bf16.mxu1 %v1327_v1  ;;  %v1017_v16 = vpack.c.bf16 %v590_v14, %v589_v13  ;;  %v1020_v18 = vpack.c.bf16 %v592_v17, %v591_v15  ;;  %v593_v19 = vld [vmem:[#allocation8 + $0x20] sm:$0xff]  ;;  %v594_v20 = vld [vmem:[#allocation8 + $0x28] sm:$0xff]  ;;  %v595_v22 = vld [vmem:[#allocation8 + $0x30] sm:$0xff]  ;;  %p1251_p1 = por %p1250_p2, %p1249_p12 }
  0xa0   : > { %v1023_v21 = vpack.c.bf16 %v594_v20, %v593_v19  ;;  %v596_v23 = vld [vmem:[#allocation8 + $0x38] sm:$0xff]  ;;  %v598_v25 = vld [vmem:[#allocation8 + $0x48] sm:$0xff]  ;;  %v599_v27 = vld [vmem:[#allocation8 + $0x50] sm:$0xff]  ;;  %v412_v34 = vshrl.u32 %v411_v33, 7 }
  0xa1   : > { %979 = vmatpush1.bf16.msra.mxu0 %v978_v41  ;;  %v1026_v24 = vpack.c.bf16 %v596_v23, %v595_v22  ;;  %v600_v28 = vld [vmem:[#allocation8 + $0x58] sm:$0xff]  ;;  %v601_v30 = vld [vmem:[#allocation8 + $0x60] sm:$0xff]  ;;  %v602_v31 = vld [vmem:[#allocation8 + $0x68] sm:$0xff]  ;;  %p1252_p4 = pnand %p1251_p1, %p1245_p7 }
  0xa2   : > { %981 = vmatprep.subr.bf16.mxu0 %v980_v42  ;;  %1003 = vmatpush3.bf16.msra.mxu1 %v1002_v56  ;;  %v1032_v29 = vpack.c.bf16 %v600_v28, %v599_v27  ;;  %v1035_v32 = vpack.c.bf16 %v602_v31, %v601_v30  ;;  %v413_v35 = vsub.s32 0, %v412_v34  ;;  %v409_v36 = vld [vmem:[%s1662_s2] sm:$0x3]  ;;  %v417_v37 = vsub.s32 1, %v412_v34  ;;  %v604_v45 = vld [vmem:[#allocation8 + $0x78] sm:$0xff] }
  0xa3   : > { %1004 = vmatprep.subr.bf16.mxu1 %v1327_v1  ;;  %v603_v44 = vld [vmem:[#allocation8 + $0x70] sm:$0xff] }
  0xa4   : > { %v414_v38 = vrot.slane %v409_v36, %v413_v35  ;;  %v418_v39 = vrot.slane %v409_v36, %v417_v37  ;;  %v1038_v46 = vpack.c.bf16 %v604_v45, %v603_v44  ;;  %v849_v47 = vld [vmem:[%s1664_s4] ss:$0 sm:$0xff] }
  0xa5   : > { %983 = vmatpush1.bf16.msra.mxu0 %v982_v50 }
  0xa6   : > { %985 = vmatprep.subr.bf16.mxu0 %v984_v51  ;;  %1006 = vmatpush3.bf16.msra.mxu1 %v1005_v63 }
  0xa7   : > { %1007 = vmatprep.subr.bf16.mxu1 %v1327_v1 }
  0xa9   : > { %987 = vmatpush1.bf16.msra.mxu0 %v986_v59 }
  0xaa   : > { %989 = vmatprep.subr.bf16.mxu0 %v988_v60  ;;  %1009 = vmatpush3.bf16.msra.mxu1 %v1008_v5 }
  0xab   : > { %1010 = vmatprep.subr.bf16.mxu1 %v1327_v1 }
  0xad   : > { %991 = vmatpush1.bf16.msra.mxu0 %v990_v4 }
  0xae   : > { %1016 = vmatprep.subr.bf16.mxu0 %v1327_v1  ;;  %1012 = vmatpush3.bf16.msra.mxu1 %v1011_v9 }
  0xaf   : > { %1013 = vmatprep.subr.bf16.mxu1 %v1327_v1 }
  0xb0   : > { %486 = vmatmul.mubr.f32.vlgmr.msra.gmra.mrb[0].mxu0 %v376_v8 }
  0xb1   : > { %957 = vmatprep.mubr.msk.f32.mxu0 %vm1328_vm0, %v1326_v0  ;;  %1018 = vmatpush3.bf16.msra.mxu0 %v1017_v16  ;;  %v597_v0 = vld [vmem:[#allocation8 + $0x40] sm:$0xff] }
  0xb2   : > { %1015 = vmatpush3.bf16.msra.mxu1 %v1014_v12  ;;  %1019 = vmatprep.subr.bf16.mxu0 %v1327_v1  ;;  %v1029_v26 = vpack.c.bf16 %v598_v25, %v597_v0 }
  0xb5   : > { %1021 = vmatpush3.bf16.msra.mxu0 %v1020_v18 }
  0xb6   : > { %1022 = vmatprep.subr.bf16.mxu0 %v1327_v1 }
  0xb9   : > { %1024 = vmatpush3.bf16.msra.mxu0 %v1023_v21 }
  0xba   : > { %1025 = vmatprep.subr.bf16.mxu0 %v1327_v1 }
  0xbd   : > { %1027 = vmatpush3.bf16.msra.mxu0 %v1026_v24 }
  0xbe   : > { %1028 = vmatprep.subr.bf16.mxu0 %v1327_v1 }
  0xc1   : > { %1030 = vmatpush3.bf16.msra.mxu0 %v1029_v26 }
  0xc2   : > { %1031 = vmatprep.subr.bf16.mxu0 %v1327_v1 }
  0xc5   : > { %1033 = vmatpush3.bf16.msra.mxu0 %v1032_v29 }
  0xc6   : > { %1034 = vmatprep.subr.bf16.mxu0 %v1327_v1 }
  0xc9   : > { %1036 = vmatpush3.bf16.msra.mxu0 %v1035_v32 }
  0xca   : > { %1037 = vmatprep.subr.bf16.mxu0 %v1327_v1 }
  0xcd   : > { %1039 = vmatpush3.bf16.msra.mxu0 %v1038_v46 }
 0x183   : > { %v487_v40 = vpop.f32.mrb[0].mxu0 }
 0x184   : > { %v488_v41 = vadd.f32 %v487_v40, %v414_v38  ;;  %v489_v42 = vpop.f32.mrb[1].mxu0 }
 0x185   : > { %v490_v43 = vadd.f32 %v489_v42, %v418_v39 }
 0x186   : > { %493 = vst.msk [vmem:[%s365_s14] sm:$0xff] %vm492_vm1, %v488_v41 }
 0x187   : > { %v494_v1 = vmax.f32 %v490_v43, 0.0 }
 0x189   : > { %923 = vmatmul.mubr.f32.vlgmr.msra.gmra.mrb[0].mxu1 %v494_v1 }
 0x25c   : > { %v584_v48 = vpop.f32.mrb[0].mxu1 }
 0x25d   : > { %v585_v49 = vadd.f32 %v849_v47, %v584_v48  ;;  %v924_v50 = vpop.f32.mrb[1].mxu1 }
 0x25f   : > { %v588_v51 = vmax.f32 %v585_v49, 0.0 }
 0x261   : > { %958 = vmatmul.mubr.f32.vlgmr.msra.gmra.mrb[2].mxu0 %v588_v51 }
 0x262   : > { %1255 = shalt.err (!%p1252_p4)
}
 0x263   : > { %s1256_s17 = scalar_lea.hbm %s1614_s26, 128  ;;  %s1260_s14 = scalar_lea.hbm %s1667_s7, 256 }
 0x264   : > { %p1257_p0 = scmp.ne.s32.totalorder %s1614_s26, %s1256_s17  ;;  %p1261_p8 = scmp.lt.u32.totalorder %s1614_s26, %s1667_s7 }
 0x265   : > { %p1262_p13 = scmp.lt.u32.totalorder %s1260_s14, %s1256_s17  ;;  %p1264_p10 = scmp.lt.u32.totalorder %s1256_s17, %s1614_s26 }
 0x266   : > { %p1258_p9 = pnand %p1257_p0, %p1517_p5 }
 0x267   : > { %p1263_p6 = por %p1262_p13, %p1261_p8 }
 0x268   : > { %p1259_p11 = pneg %p1258_p9 }
 0x269   : > { %p1265_p3 = por %p1264_p10, %p1263_p6 }
 0x26b   : > { %p1266_p7 = pnand %p1265_p3, %p1259_p11 }
 0x26d   : > { %1269 = shalt.err (!%p1266_p7)
}
 0x26e   : > { %1054 = dma.vmem_to_hbm [thread:$0]  (%p1517_p5), %s709_s23, 128, %s1614_s26, %s691_s10   ;;  %v850_v52 = vld [vmem:[%s1666_s6] ss:$0 sm:$0xff]  ;;  %vm688_vm2 = vcmask 31744  }
 0x26f   : > { %p372_p12 = scmp.lt.s32.totalorder %s1396_s9, 1 }
 0x271   : > { %s1701_s9 = smov (!%p372_p12, %s1396_s9), 1 }
 0x272   : > { %s848_s20 = sshll.u32 %s1701_s9, 3 }
 0x273   : > { %s375_s19 = scalar_lea.vmem %s1668_s8, %s848_s20 }
 0x334   : > { %v678_v53 = vpop.f32.mrb[2].mxu0 }
 0x335   : > { %v679_v54 = vadd.f32 %v850_v52, %v678_v53  ;;  %v959_v55 = vpop.f32.mrb[3].mxu0 }
 0x337   : > { %v851_v56 = vmul.f32 -1.442695, %v679_v54 }
 0x339   : > { %1124 = vpow2.f32 %v851_v56 }
 0x343   : > { %v1125_v57 = vpop.eup %1124 }
 0x344   : > { %v685_v58 = vadd.f32 1.0, %v1125_v57 }
 0x346   : > { %1126 = vrcp.f32 %v685_v58 }
 0x350   : > { %v1127_v59 = vpop.eup %1126 }
 0x351   : > { %689 = vst.msk [vmem:[%s375_s19] sm:$0xff] %vm688_vm2, %v1127_v59 }
 0x352 PF: > { %s1692_s23 = sld [smem:[#allocation15_spill]]  ;;  %s1693_s26 = sld [smem:[#allocation16_spill]] }
 0x353   : > { %p1695_p2 = scmp.ge.s32.totalorder %s1316_s30, 2 }
 0x358   : > { %s723_s10 = sand.u32 1, %s1692_s23   ;;  %p1694_p5 = scmp.ne.s32.totalorder %s1693_s26, 0 }
 0x359   : > { %s724_s1 = scalar_lea.sflag [#allocation4], %s723_s10 }
 0x35a   : > { %p1071_p1 = pnand %p1695_p2, %p1694_p5 }
 0x35c   : > { %1299 = dma.done.wait (!%p1071_p1), %s724_s1, 128  }
 0x35d   : > { %1301 = vsyncadd (!%p1071_p1), %s724_s1, 4294967168  ;;  %p24_p4 = scmp.ge.s32.totalorder %s1485_s22, 4   ;;  %s1696_s27 = smov %s1308_s28 }
 0x35e   : > { %s1697_s28 = smov %s1312_s29  ;;  %s1698_s29 = smov %s1513_s16 }
 0x35f   : > { %s1699_s30 = smov %s1485_s22  ;;  %26 = sbr.rel (!%p24_p4) target bundleno = 9 (0x9), region = 117 }
 0x366   :  { %736 = vsyncpa [#allocation3], 1 }
 0x367   :  { %738 = vsyncpa [#allocation3 + $0x1], 1 }
 0x368   :  { %739 = vsyncpa [#allocation6], 1 }
 0x369   :  { %740 = vsyncpa [#allocation9], 1 }
 0x36a   :  { %741 = vsyncpa [#allocation4], 1 }
 0x36b   :  { %743 = vsyncpa [#allocation4 + $0x1], 1 }

</bundles_post_ra>
